<compile_context>
chip_gen: v7x
topology: tpu7x:2x2x1
jax: 0.10.0
libtpu: 0.0.40
codegen_flags: <defaults>
</compile_context>

<pallas_src>
import jax
import jax.numpy as jnp
from jax.experimental import pallas as pl
from jax.experimental.pallas import tpu as pltpu

LANE = 128      # lane width (last-dim tiling quantum)
SUBLANE = 8     # sublane width (second-to-last-dim quantum)


def _round_up(n, m):
    return ((n + m - 1) // m) * m


# ---------------------------------------------------------------------------
# Kernel: one batch tile of the fused 3-layer MLP decoder.
# ---------------------------------------------------------------------------
def decoder_kernel(x_ref, w1_ref, b1_ref, w2_ref, b2_ref, w3_ref, b3_ref, o_ref):
    f32 = jnp.float32
    # Layer 1: Linear + Tanh (MXU matmul, f32 accumulation regardless of
    # operand dtype; bias/tanh in f32).
    h1 = jnp.tanh(
        jnp.dot(x_ref[...], w1_ref[...], preferred_element_type=f32)
        + b1_ref[...]
    )
    # Layer 2: Linear + Tanh.
    h2 = jnp.tanh(
        jnp.dot(h1.astype(w2_ref.dtype), w2_ref[...], preferred_element_type=f32)
        + b2_ref[...]
    )
    # Final Linear.
    z = (
        jnp.dot(h2.astype(w3_ref.dtype), w3_ref[...], preferred_element_type=f32)
        + b3_ref[...]
    )
    # Exact sigmoid: EUP exp + one divide, fully hidden under the DMA stream.
    o_ref[...] = (1.0 / (1.0 + jnp.exp(-z))).astype(o_ref.dtype)


# ---------------------------------------------------------------------------
# One-time parameter preparation (hoisted out of the per-call path).
# ---------------------------------------------------------------------------
def prepare_decoder_params(params, *, use_bf16=True):
    """Pad h_dim (VMEM-only intermediate dim) to a lane multiple and cast the
    MXU operands ONCE.  z_dim / x_dim — the HBM-facing dims — stay unpadded.

    Weights are stored pre-transposed as (in, out); biases as (1, out).
    Zero padding is semantics-preserving: tanh(0)=0 and the padded h rows of
    W3 are zero, so padded hidden channels contribute nothing.
    """
    w1, b1, w2, b2, w3, b3 = (
        params["w1"], params["b1"], params["w2"],
        params["b2"], params["w3"], params["b3"],
    )
    z_dim, h_dim = w1.shape
    x_dim = w3.shape[1]
    hp = _round_up(h_dim, LANE)

    f32 = jnp.float32
    op_dt = jnp.bfloat16 if use_bf16 else f32

    w1p = jnp.zeros((z_dim, hp), op_dt).at[:, :h_dim].set(w1.astype(op_dt))
    w2p = jnp.zeros((hp, hp), op_dt).at[:h_dim, :h_dim].set(w2.astype(op_dt))
    w3p = jnp.zeros((hp, x_dim), op_dt).at[:h_dim, :].set(w3.astype(op_dt))
    b1p = jnp.zeros((1, hp), f32).at[:, :h_dim].set(b1.astype(f32))
    b2p = jnp.zeros((1, hp), f32).at[:, :h_dim].set(b2.astype(f32))
    b3p = b3.astype(f32).reshape(1, x_dim)

    return {
        "w1": w1p, "b1": b1p, "w2": w2p, "b2": b2p, "w3": w3p, "b3": b3p,
        "dims": (z_dim, h_dim, x_dim, hp), "op_dtype": op_dt,
    }


def _choose_tile(batch, block_b):
    """Batch-tile rows: >= ~8 grid steps (>=3-4 per TensorCore on v7x) once the
    batch is large enough, but never below 512 rows (per-step overhead) nor
    above block_b; always a multiple of 8 (sublane)."""
    b8 = _round_up(batch, SUBLANE)
    tb = _round_up(max(pl.cdiv(batch, 8), 1), SUBLANE)
    tb = max(min(512, b8), min(tb, block_b))
    return min(tb, b8)


# ---------------------------------------------------------------------------
# Forward wrapper.
# ---------------------------------------------------------------------------
def decoder_forward(x, prepared, *, block_b=4096):
    """x: (B, z_dim) float32.  prepared: output of prepare_decoder_params.
    Returns (B, x_dim) float32."""
    z_dim, h_dim, x_dim, hp = prepared["dims"]
    op_dt = prepared["op_dtype"]
    B = x.shape[0]
    assert x.shape[1] == z_dim, (x.shape, z_dim)

    tb = _choose_tile(B, block_b)
    n_tiles = pl.cdiv(B, tb)
    bp = n_tiles * tb

    # Only the activations are touched per call: cast (+ pad batch if ragged).
    x_in = x.astype(op_dt)
    if bp != B:
        x_in = jnp.zeros((bp, z_dim), op_dt).at[:B, :].set(x_in)

    w1p, b1p, w2p, b2p, w3p, b3p = (
        prepared["w1"], prepared["b1"], prepared["w2"],
        prepared["b2"], prepared["w3"], prepared["b3"],
    )

    const2d = lambda i: (0, 0)   # weights/biases stay resident across the grid

    itemsize = jnp.dtype(op_dt).itemsize
    cost = pl.CostEstimate(
        flops=2 * bp * (z_dim * hp + hp * hp + hp * x_dim),
        transcendentals=bp * (2 * hp + x_dim),
        bytes_accessed=(bp * z_dim * itemsize            # x stream in
                        + bp * x_dim * 4                  # out stream
                        + (z_dim * hp + hp * hp + hp * x_dim) * itemsize
                        + (2 * hp + x_dim) * 4),          # weights + biases
    )

    out = pl.pallas_call(
        decoder_kernel,
        out_shape=jax.ShapeDtypeStruct((bp, x_dim), jnp.float32),
        grid_spec=pl.GridSpec(
            grid=(n_tiles,),
            in_specs=[
                pl.BlockSpec((tb, z_dim), lambda i: (i, 0)),   # x tile (unpadded lanes)
                pl.BlockSpec((z_dim, hp), const2d),            # W1
                pl.BlockSpec((1, hp), const2d),                # b1
                pl.BlockSpec((hp, hp), const2d),               # W2
                pl.BlockSpec((1, hp), const2d),                # b2
                pl.BlockSpec((hp, x_dim), const2d),            # W3
                pl.BlockSpec((1, x_dim), const2d),             # b3
            ],
            out_specs=pl.BlockSpec((tb, x_dim), lambda i: (i, 0)),
        ),
        compiler_params=pltpu.CompilerParams(
            # Independent batch tiles -> shard across the 2 TensorCores on v7x.
            dimension_semantics=("parallel",),
        ),
        cost_estimate=cost,
    )(x_in, w1p, b1p, w2p, b2p, w3p, b3p)

    return out if bp == B else out[:B]


# ---------------------------------------------------------------------------
# Init + pure-JAX reference.
# ---------------------------------------------------------------------------
def init_decoder_params(key, x_dim, h_dim, z_dim):
    """nn.Linear-style U[-1/sqrt(fan_in), 1/sqrt(fan_in)] init.
    Weights stored transposed relative to PyTorch: (in, out); biases (1, out)."""
    ks = jax.random.split(key, 6)

    def linear(kw, kb, fan_in, fan_out):
        bound = 1.0 / jnp.sqrt(fan_in)
        w = jax.random.uniform(kw, (fan_in, fan_out), jnp.float32, -bound, bound)
        b = jax.random.uniform(kb, (1, fan_out), jnp.float32, -bound, bound)
        return w, b

    # Decoder: net = Seq(fc_block(z_dim, h_dim), fc_block(h_dim, h_dim));
    #          fc  = Linear(h_dim, x_dim)
    w1, b1 = linear(ks[0], ks[1], z_dim, h_dim)
    w2, b2 = linear(ks[2], ks[3], h_dim, h_dim)
    w3, b3 = linear(ks[4], ks[5], h_dim, x_dim)
    return {"w1": w1, "b1": b1, "w2": w2, "b2": b2, "w3": w3, "b3": b3}


def decoder_reference(x, params):
    h1 = jnp.tanh(x @ params["w1"] + params["b1"])
    h2 = jnp.tanh(h1 @ params["w2"] + params["b2"])
    z = h2 @ params["w3"] + params["b3"]
    return jax.nn.sigmoid(z)


if __name__ == "__main__":
    # Small shapes consistent with Decoder(x_dim, h_dim, z_dim).
    x_dim, h_dim, z_dim = 32, 64, 16

    key = jax.random.PRNGKey(0)
    k_params, k_x1, k_x2 = jax.random.split(key, 3)
    params = init_decoder_params(k_params, x_dim, h_dim, z_dim)

    prep_f32 = prepare_decoder_params(params, use_bf16=False)
    prep_bf16 = prepare_decoder_params(params, use_bf16=True)   # default path

    # --- case 1: tiny batch (single grid step), f32 operands, exact sigmoid --
    b_small = 8
    x1 = jax.random.normal(k_x1, (b_small, z_dim), jnp.float32)
    out1 = jax.block_until_ready(decoder_forward(x1, prep_f32))
    ref1 = decoder_reference(x1, params)
    assert out1.shape == (b_small, x_dim), out1.shape
    assert jnp.allclose(out1, ref1, atol=1e-4, rtol=1e-4), "mismatch (small batch, f32)"

    # --- case 2: ragged multi-tile batch (exercises batch padding), f32 -----
    b_large = 1000
    x2 = jax.random.normal(k_x2, (b_large, z_dim), jnp.float32)
    out2 = jax.block_until_ready(decoder_forward(x2, prep_f32, block_b=512))
    ref2 = decoder_reference(x2, params)
    assert out2.shape == (b_large, x_dim), out2.shape
    assert jnp.allclose(out2, ref2, atol=1e-4, rtol=1e-4), "mismatch (large batch, f32)"

    # --- case 3: bf16 MXU operands (default), f32 accumulation/output -------
    out3 = jax.block_until_ready(decoder_forward(x2, prep_bf16))
    assert out3.shape == (b_large, x_dim), out3.shape
    assert jnp.max(jnp.abs(out3 - ref2)) < 5e-2, "mismatch (bf16 path)"

    print("KERNEL_OK")
</pallas_src>

<mosaic_0001>
module attributes {stable_mosaic.version = 11 : i64} {
  func.func @decoder_kernel(%arg0: i32, %arg1: memref<8x16xf32, #tpu.memory_space<vmem>>, %arg2: memref<16x128xf32, #tpu.memory_space<vmem>>, %arg3: memref<1x128xf32, #tpu.memory_space<vmem>>, %arg4: memref<128x128xf32, #tpu.memory_space<vmem>>, %arg5: memref<1x128xf32, #tpu.memory_space<vmem>>, %arg6: memref<128x32xf32, #tpu.memory_space<vmem>>, %arg7: memref<1x32xf32, #tpu.memory_space<vmem>>, %arg8: memref<8x32xf32, #tpu.memory_space<vmem>>) attributes {dimension_semantics = [#tpu.dimension_semantics<parallel>], iteration_bounds = array<i64: 1>, scalar_prefetch = 0 : i64, scratch_operands = 0 : i64, tpu.core_type = #tpu.core_type<tc>, window_params = [{transform_indices = @transform_0, window_bounds = array<i64: 8, 16>}, {pipeline_mode = #tpu.pipeline_mode<synchronous>, transform_indices = @transform_1, window_bounds = array<i64: 16, 128>}, {pipeline_mode = #tpu.pipeline_mode<synchronous>, transform_indices = @transform_2, window_bounds = array<i64: 1, 128>}, {pipeline_mode = #tpu.pipeline_mode<synchronous>, transform_indices = @transform_3, window_bounds = array<i64: 128, 128>}, {pipeline_mode = #tpu.pipeline_mode<synchronous>, transform_indices = @transform_4, window_bounds = array<i64: 1, 128>}, {pipeline_mode = #tpu.pipeline_mode<synchronous>, transform_indices = @transform_5, window_bounds = array<i64: 128, 32>}, {pipeline_mode = #tpu.pipeline_mode<synchronous>, transform_indices = @transform_6, window_bounds = array<i64: 1, 32>}, {transform_indices = @transform_7, window_bounds = array<i64: 8, 32>}]} {
    %c0 = arith.constant 0 : index
    %c0_0 = arith.constant 0 : index
    %0 = vector.load %arg1[%c0, %c0_0] : memref<8x16xf32, #tpu.memory_space<vmem>>, vector<8x16xf32>
    %c0_1 = arith.constant 0 : index
    %c0_2 = arith.constant 0 : index
    %1 = vector.load %arg2[%c0_1, %c0_2] : memref<16x128xf32, #tpu.memory_space<vmem>>, vector<16x128xf32>
    %cst = arith.constant dense<0.000000e+00> : vector<8x128xf32>
    %2 = tpu.matmul %0, %1, %cst {dimension_numbers = #tpu.dot_dimension_numbers<[1], [0], [0], [1], [0, 0, 1, 1], [], []>} : vector<8x16xf32>, vector<16x128xf32>, vector<8x128xf32> -> vector<8x128xf32>
    %c0_3 = arith.constant 0 : index
    %c0_4 = arith.constant 0 : index
    %3 = vector.load %arg3[%c0_3, %c0_4] : memref<1x128xf32, #tpu.memory_space<vmem>>, vector<1x128xf32>
    %4 = vector.broadcast %3 : vector<1x128xf32> to vector<8x128xf32>
    %5 = arith.addf %2, %4 : vector<8x128xf32>
    %6 = math.tanh %5 : vector<8x128xf32>
    %c0_5 = arith.constant 0 : index
    %c0_6 = arith.constant 0 : index
    %7 = vector.load %arg4[%c0_5, %c0_6] : memref<128x128xf32, #tpu.memory_space<vmem>>, vector<128x128xf32>
    %cst_7 = arith.constant dense<0.000000e+00> : vector<8x128xf32>
    %8 = tpu.matmul %6, %7, %cst_7 {dimension_numbers = #tpu.dot_dimension_numbers<[1], [0], [0], [1], [0, 0, 1, 1], [], []>} : vector<8x128xf32>, vector<128x128xf32>, vector<8x128xf32> -> vector<8x128xf32>
    %c0_8 = arith.constant 0 : index
    %c0_9 = arith.constant 0 : index
    %9 = vector.load %arg5[%c0_8, %c0_9] : memref<1x128xf32, #tpu.memory_space<vmem>>, vector<1x128xf32>
    %10 = vector.broadcast %9 : vector<1x128xf32> to vector<8x128xf32>
    %11 = arith.addf %8, %10 : vector<8x128xf32>
    %12 = math.tanh %11 : vector<8x128xf32>
    %c0_10 = arith.constant 0 : index
    %c0_11 = arith.constant 0 : index
    %13 = vector.load %arg6[%c0_10, %c0_11] : memref<128x32xf32, #tpu.memory_space<vmem>>, vector<128x32xf32>
    %cst_12 = arith.constant dense<0.000000e+00> : vector<8x32xf32>
    %14 = tpu.matmul %12, %13, %cst_12 {dimension_numbers = #tpu.dot_dimension_numbers<[1], [0], [0], [1], [0, 0, 1, 1], [], []>} : vector<8x128xf32>, vector<128x32xf32>, vector<8x32xf32> -> vector<8x32xf32>
    %c0_13 = arith.constant 0 : index
    %c0_14 = arith.constant 0 : index
    %15 = vector.load %arg7[%c0_13, %c0_14] : memref<1x32xf32, #tpu.memory_space<vmem>>, vector<1x32xf32>
    %16 = vector.broadcast %15 : vector<1x32xf32> to vector<8x32xf32>
    %17 = arith.addf %14, %16 : vector<8x32xf32>
    %cst_15 = arith.constant 0.000000e+00 : f32
    %18 = vector.broadcast %cst_15 : f32 to vector<8x32xf32>
    %19 = arith.subf %18, %17 : vector<8x32xf32>
    %20 = math.exp %19 : vector<8x32xf32>
    %cst_16 = arith.constant 1.000000e+00 : f32
    %21 = vector.broadcast %cst_16 : f32 to vector<8x32xf32>
    %22 = arith.addf %21, %20 : vector<8x32xf32>
    %cst_17 = arith.constant 1.000000e+00 : f32
    %23 = vector.broadcast %cst_17 : f32 to vector<8x32xf32>
    %24 = arith.divf %23, %22 : vector<8x32xf32>
    %c0_18 = arith.constant 0 : index
    %c0_19 = arith.constant 0 : index
    %25 = vector.load %arg8[%c0_18, %c0_19] : memref<8x32xf32, #tpu.memory_space<vmem>>, vector<8x32xf32>
    tpu.vector_store %arg8[%c0_18, %c0_19], %24 {strides = array<i32>} : memref<8x32xf32, #tpu.memory_space<vmem>>, vector<8x32xf32>,
    return
  }
  func.func @transform_0(%arg0: i32) -> (i32, i32) {
    %c0_i32 = arith.constant 0 : i32
    %c0_i32_0 = arith.constant 0 : i32
    return %arg0, %c0_i32 : i32, i32
  }
  func.func @transform_1(%arg0: i32) -> (i32, i32) {
    %c0_i32 = arith.constant 0 : i32
    %c0_i32_0 = arith.constant 0 : i32
    %c0_i32_1 = arith.constant 0 : i32
    return %c0_i32, %c0_i32_0 : i32, i32
  }
  func.func @transform_2(%arg0: i32) -> (i32, i32) {
    %c0_i32 = arith.constant 0 : i32
    %c0_i32_0 = arith.constant 0 : i32
    %c0_i32_1 = arith.constant 0 : i32
    return %c0_i32, %c0_i32_0 : i32, i32
  }
  func.func @transform_3(%arg0: i32) -> (i32, i32) {
    %c0_i32 = arith.constant 0 : i32
    %c0_i32_0 = arith.constant 0 : i32
    %c0_i32_1 = arith.constant 0 : i32
    return %c0_i32, %c0_i32_0 : i32, i32
  }
  func.func @transform_4(%arg0: i32) -> (i32, i32) {
    %c0_i32 = arith.constant 0 : i32
    %c0_i32_0 = arith.constant 0 : i32
    %c0_i32_1 = arith.constant 0 : i32
    return %c0_i32, %c0_i32_0 : i32, i32
  }
  func.func @transform_5(%arg0: i32) -> (i32, i32) {
    %c0_i32 = arith.constant 0 : i32
    %c0_i32_0 = arith.constant 0 : i32
    %c0_i32_1 = arith.constant 0 : i32
    return %c0_i32, %c0_i32_0 : i32, i32
  }
  func.func @transform_6(%arg0: i32) -> (i32, i32) {
    %c0_i32 = arith.constant 0 : i32
    %c0_i32_0 = arith.constant 0 : i32
    %c0_i32_1 = arith.constant 0 : i32
    return %c0_i32, %c0_i32_0 : i32, i32
  }
  func.func @transform_7(%arg0: i32) -> (i32, i32) {
    %c0_i32 = arith.constant 0 : i32
    %c0_i32_0 = arith.constant 0 : i32
    return %arg0, %c0_i32 : i32, i32
  }
}

</mosaic_0001>

<bundles_post_ra>
// kernel: tpu_custom_call.1
= control target key start
LH: loop header
LB: loop body
LE: loop exit
PB: predicated region body
PF: predicated region fallthrough
CT: control target
= control target key end

     0   :  { %v526_v2 = vmov 0.0|0.0   ;;  %vm527_vm0 = vmmov 0   ;;  %v528_v4 = vmov 0.0   ;;  %vm37_vm1 = vcmask 130048   ;;  %s716_s0 = inlined_call_operand.vmem [shape: f32[8,16], index: 0, kind: input, shape index: {}]   ;;  %s717_s1 = inlined_call_operand.vmem [shape: f32[16,128], index: 1, kind: input, shape index: {}]   ;;  %s718_s2 = inlined_call_operand.vmem [shape: f32[1,128], index: 2, kind: input, shape index: {}]   ;;  %s719_s3 = inlined_call_operand.vmem [shape: f32[128,128], index: 3, kind: input, shape index: {}]   ;;  %s720_s4 = inlined_call_operand.vmem [shape: f32[1,128], index: 4, kind: input, shape index: {}]   ;;  %s721_s5 = inlined_call_operand.vmem [shape: f32[128,32], index: 5, kind: input, shape index: {}]   ;;  %s722_s6 = inlined_call_operand.vmem [shape: f32[1,32], index: 6, kind: input, shape index: {}]   ;;  %s723_s7 = inlined_call_operand.hbm [shape: f32[8,32], index: 7, kind: output, shape index: {}]  }
   0x1   :  { %v28_v0 = vld [vmem:[%s717_s1] sm:$0xff]  ;;  %v29_v1 = vld [vmem:[%s717_s1 + $0x8] sm:$0xff]  ;;  %439 = vmatprep.subr.bf16.mxu0 %v526_v2  ;;  %366 = vmatprep.mubr.msk.f32.mxu0 %vm527_vm0, %v528_v4  ;;  %v114_v7 = vld [vmem:[%s719_s3 + $0x10] sm:$0xff] }
   0x2   :  { %v440_v3 = vpack.c.bf16 %v29_v1, %v28_v0  ;;  %v112_v5 = vld [vmem:[%s719_s3] sm:$0xff]  ;;  %v113_v6 = vld [vmem:[%s719_s3 + $0x8] sm:$0xff]  ;;  %442 = vmatprep.subr.bf16.mxu1 %v526_v2  ;;  %v115_v9 = vld [vmem:[%s719_s3 + $0x18] sm:$0xff]  ;;  %401 = vmatprep.mubr.msk.f32.mxu1 %vm527_vm0, %v528_v4 }
   0x3   :  { %v443_v8 = vpack.c.bf16 %v113_v6, %v112_v5  ;;  %v27_v10 = vld [vmem:[%s716_s0] sm:$0xff]  ;;  %v446_v11 = vpack.c.bf16 %v115_v9, %v114_v7 }
   0x4   :  { %441 = vmatpush3.bf16.msra.mxu0 %v440_v3 }
   0x5   :  { %444 = vmatpush3.bf16.msra.mxu1 %v443_v8  ;;  %466 = vmatprep.subr.bf16.mxu0 %v526_v2 }
   0x6   :  { %12 = vsyncpa [#allocation3], 0  ;;  %445 = vmatprep.subr.bf16.mxu1 %v526_v2  ;;  %v116_v12 = vld [vmem:[%s719_s3 + $0x20] sm:$0xff]  ;;  %v117_v13 = vld [vmem:[%s719_s3 + $0x28] sm:$0xff]  ;;  %vm305_vm2 = vcmask 261120  }
   0x7   :  { %367 = vmatmul.mubr.msk.f32.vlgmr.msra.gmra.mrb[0].mxu0 %vm37_vm1, %v27_v10  ;;  %v449_v14 = vpack.c.bf16 %v117_v13, %v116_v12  ;;  %v118_v15 = vld [vmem:[%s719_s3 + $0x30] sm:$0xff]  ;;  %v119_v16 = vld [vmem:[%s719_s3 + $0x38] sm:$0xff]  ;;  %v120_v18 = vld [vmem:[%s719_s3 + $0x40] sm:$0xff] }
   0x8   :  { %436 = vmatprep.mubr.msk.f32.mxu0 %vm527_vm0, %v528_v4  ;;  %v452_v17 = vpack.c.bf16 %v119_v16, %v118_v15  ;;  %v121_v19 = vld [vmem:[%s719_s3 + $0x48] sm:$0xff]  ;;  %v122_v21 = vld [vmem:[%s719_s3 + $0x50] sm:$0xff]  ;;  %v123_v22 = vld [vmem:[%s719_s3 + $0x58] sm:$0xff] }
   0x9   :  { %447 = vmatpush3.bf16.msra.mxu1 %v446_v11  ;;  %v455_v20 = vpack.c.bf16 %v121_v19, %v120_v18  ;;  %v458_v23 = vpack.c.bf16 %v123_v22, %v122_v21  ;;  %v124_v24 = vld [vmem:[%s719_s3 + $0x60] sm:$0xff]  ;;  %v125_v25 = vld [vmem:[%s719_s3 + $0x68] sm:$0xff]  ;;  %v126_v27 = vld [vmem:[%s719_s3 + $0x70] sm:$0xff] }
   0xa   :  { %448 = vmatprep.subr.bf16.mxu1 %v526_v2  ;;  %v461_v26 = vpack.c.bf16 %v125_v25, %v124_v24  ;;  %v127_v28 = vld [vmem:[%s719_s3 + $0x78] sm:$0xff]  ;;  %v206_v30 = vld [vmem:[%s721_s5] sm:$0xff]  ;;  %v207_v31 = vld [vmem:[%s721_s5 + $0x8] sm:$0xff] }
   0xb   :  { %v464_v29 = vpack.c.bf16 %v127_v28, %v126_v27  ;;  %v208_v32 = vld [vmem:[%s721_s5 + $0x10] sm:$0xff]  ;;  %v467_v33 = vpack.c.bf16 %v207_v31, %v206_v30  ;;  %v209_v34 = vld [vmem:[%s721_s5 + $0x18] sm:$0xff]  ;;  %v210_v36 = vld [vmem:[%s721_s5 + $0x20] sm:$0xff] }
   0xc   :  { %v470_v35 = vpack.c.bf16 %v209_v34, %v208_v32  ;;  %v211_v37 = vld [vmem:[%s721_s5 + $0x28] sm:$0xff]  ;;  %v212_v39 = vld [vmem:[%s721_s5 + $0x30] sm:$0xff]  ;;  %v213_v40 = vld [vmem:[%s721_s5 + $0x38] sm:$0xff] }
   0xd   :  { %450 = vmatpush3.bf16.msra.mxu1 %v449_v14  ;;  %468 = vmatpush3.bf16.msra.mxu0 %v467_v33  ;;  %v473_v38 = vpack.c.bf16 %v211_v37, %v210_v36  ;;  %v476_v41 = vpack.c.bf16 %v213_v40, %v212_v39  ;;  %v214_v42 = vld [vmem:[%s721_s5 + $0x40] sm:$0xff]  ;;  %v215_v43 = vld [vmem:[%s721_s5 + $0x48] sm:$0xff]  ;;  %v216_v50 = vld [vmem:[%s721_s5 + $0x50] sm:$0xff] }
   0xe   :  { %451 = vmatprep.subr.bf16.mxu1 %v526_v2  ;;  %469 = vmatprep.subr.bf16.mxu0 %v526_v2  ;;  %v479_v44 = vpack.c.bf16 %v215_v43, %v214_v42  ;;  %v321_v45 = vld [vmem:[%s718_s2] ss:$0 sm:$0xff]  ;;  %v217_v51 = vld [vmem:[%s721_s5 + $0x58] sm:$0xff]  ;;  %v219_v54 = vld [vmem:[%s721_s5 + $0x68] sm:$0xff] }
   0xf   :  { %v482_v52 = vpack.c.bf16 %v217_v51, %v216_v50  ;;  %v218_v53 = vld [vmem:[%s721_s5 + $0x60] sm:$0xff]  ;;  %v220_v56 = vld [vmem:[%s721_s5 + $0x70] sm:$0xff]  ;;  %v221_v57 = vld [vmem:[%s721_s5 + $0x78] sm:$0xff] }
  0x10   :  { %v485_v55 = vpack.c.bf16 %v219_v54, %v218_v53  ;;  %v488_v58 = vpack.c.bf16 %v221_v57, %v220_v56  ;;  %v323_v59 = vld [vmem:[%s720_s4] ss:$0 sm:$0xff]  ;;  %s529_s4 = smov [#allocation2]  }
  0x11   :  { %453 = vmatpush3.bf16.msra.mxu1 %v452_v17  ;;  %471 = vmatpush3.bf16.msra.mxu0 %v470_v35  ;;  %v324_v0 = vld [vmem:[%s722_s6] ss:$0 sm:$0xff]  ;;  %s313_s5 = sshll.u32 %s529_s4, 4  ;;  %s314_s5 = int_to_ptr.vmem [resolvable:$true] %s313_s5 }
  0x12   :  { %454 = vmatprep.subr.bf16.mxu1 %v526_v2  ;;  %472 = vmatprep.subr.bf16.mxu0 %v526_v2  ;;  %s502_s22 = scalar_lea.vmem %s314_s5, 128  ;;  %p507_p1 = scmp.lt.s32.totalorder %s314_s5, %s314_s5 }
  0x13   :  { %p503_p0 = scmp.ne.s32.totalorder %s314_s5, %s502_s22  ;;  %p508_p2 = scmp.lt.s32.totalorder %s502_s22, %s502_s22 }
  0x15   :  { %456 = vmatpush3.bf16.msra.mxu1 %v455_v20  ;;  %474 = vmatpush3.bf16.msra.mxu0 %v473_v38  ;;  %p509_p3 = por %p508_p2, %p507_p1 }
  0x16   :  { %457 = vmatprep.subr.bf16.mxu1 %v526_v2  ;;  %475 = vmatprep.subr.bf16.mxu0 %v526_v2 }
  0x17   :  { %p510_p4 = pnand %p509_p3, %p503_p0 }
  0x19   :  { %459 = vmatpush3.bf16.msra.mxu1 %v458_v23  ;;  %477 = vmatpush3.bf16.msra.mxu0 %v476_v41 }
  0x1a   :  { %460 = vmatprep.subr.bf16.mxu1 %v526_v2  ;;  %478 = vmatprep.subr.bf16.mxu0 %v526_v2 }
  0x1d   :  { %462 = vmatpush3.bf16.msra.mxu1 %v461_v26  ;;  %480 = vmatpush3.bf16.msra.mxu0 %v479_v44 }
  0x1e   :  { %463 = vmatprep.subr.bf16.mxu1 %v526_v2  ;;  %481 = vmatprep.subr.bf16.mxu0 %v526_v2 }
  0x21   :  { %465 = vmatpush3.bf16.msra.mxu1 %v464_v29  ;;  %483 = vmatpush3.bf16.msra.mxu0 %v482_v52 }
  0x22   :  { %484 = vmatprep.subr.bf16.mxu0 %v526_v2 }
  0x25   :  { %486 = vmatpush3.bf16.msra.mxu0 %v485_v55 }
  0x26   :  { %487 = vmatprep.subr.bf16.mxu0 %v526_v2 }
  0x29   :  { %489 = vmatpush3.bf16.msra.mxu0 %v488_v58 }
  0xda   :  { %v107_v46 = vpop.f32.mrb[0].mxu0 }
  0xdb   :  { %v108_v47 = vadd.f32 %v321_v45, %v107_v46  ;;  %v368_v48 = vpop.f32.mrb[1].mxu0 }
  0xdd   :  { %494 = vtanh.f32 %v108_v47 }
  0xe7   :  { %v495_v49 = vpop.eup %494 }
  0xe8   :  { %402 = vmatmul.mubr.f32.vlgmr.msra.gmra.mrb[0].mxu1 %v495_v49 }
 0x1bb   :  { %v201_v60 = vpop.f32.mrb[0].mxu1 }
 0x1bc   :  { %v202_v61 = vadd.f32 %v323_v59, %v201_v60  ;;  %v403_v62 = vpop.f32.mrb[1].mxu1 }
 0x1be   :  { %496 = vtanh.f32 %v202_v61 }
 0x1c8   :  { %v497_v63 = vpop.eup %496 }
 0x1c9   :  { %437 = vmatmul.mubr.f32.vlgmr.msra.gmra.mrb[2].mxu0 %v497_v63 }
 0x29c   :  { %v295_v1 = vpop.f32.mrb[2].mxu0 }
 0x29d   :  { %v296_v3 = vadd.f32 %v324_v0, %v295_v1  ;;  %v438_v4 = vpop.f32.mrb[3].mxu0 }
 0x29f   :  { %v299_v5 = vsub.f32 0.0, %v296_v3 }
 0x2a1   :  { %v300_v2 = vmul.f32 1.442695, %v299_v5 }
 0x2a3   :  { %498 = vpow2.f32 %v300_v2 }
 0x2ad   :  { %v499_v6 = vpop.eup %498 }
 0x2ae   :  { %v302_v7 = vadd.f32 1.0, %v499_v6 }
 0x2b0   :  { %500 = vrcp.f32 %v302_v7 }
 0x2ba   :  { %v501_v8 = vpop.eup %500 }
 0x2bb   :  { %306 = vst.msk [vmem:[#allocation2] sm:$0xff] %vm305_vm2, %v501_v8 }
 0x2bc   :  { %513 = shalt.err (!%p510_p4)
}
 0x2bd   :  { %s514_s24 = scalar_lea.hbm %s723_s7, 128 }
 0x2be   :  { %p515_p5 = scmp.ne.s32.totalorder %s723_s7, %s514_s24  ;;  %p518_p6 = scmp.lt.u32.totalorder %s514_s24, %s723_s7 }
 0x2c0   :  { %p520_p7 = pnand %p518_p6, %p515_p5 }
 0x2c2   :  { %523 = shalt.err (!%p520_p7)
}
 0x2c3   :  { %316 = dma.vmem_to_hbm [thread:$0]  %s314_s5, 128, %s723_s7, [#allocation3]  }
 0x2c4   :  { %524 = dma.done.wait [#allocation3], 128  }
 0x2c5   :  { %525 = vsyncadd [#allocation3], 4294967168 }
 0x2c6   :  { %320 = vsyncpa [#allocation3], 1 }

</bundles_post_ra>
